<compile_context>
chip_gen: v5e
topology: v5e:2x2
jax: 0.10.0
libtpu: 0.0.40
codegen_flags: <defaults>
</compile_context>

<pallas_src>
import jax
import jax.numpy as jnp
from jax.experimental import pallas as pl
from jax.experimental.pallas import tpu as pltpu

# ---------------------------------------------------------------------------
# Problem sizes (match the PyTorch module's assumptions)
# ---------------------------------------------------------------------------
B = 2                  # batch
C, H_IMG, W_IMG = 1, 28, 28
D = C * H_IMG * W_IMG  # 784 true feature count
DP = 896               # 7 * 128 -> lane-dense padded feature dim
HIDDEN = 128
NUM_STEPS = 1000
NUM_CLASSES = 10
BETA_START, BETA_END = 1e-4, 0.02

_VMEM = pl.BlockSpec(memory_space=pltpu.MemorySpace.VMEM)


# ---------------------------------------------------------------------------
# Single fused kernel:
#   noisy   = sqrt(a_bar)*x + sqrt(1-a_bar)*noise                    (VPU, f32)
#   h       = relu(noisy @ W1 + b1 + cond)                           (MXU bf16)
#   est     = h @ W2 + b2                                            (MXU bf16)
#   loss    = sum((est - noise)^2) / (B*D)                           (VPU/XLU)
# All intermediates live in vregs/VMEM; only the (1,1) loss is written out.
# ---------------------------------------------------------------------------
def _fused_diffusion_kernel(x_ref, noise_ref, sab_ref, s1m_ref, cond_ref,
                            w1_ref, b1_ref, w2_ref, b2_ref, loss_ref):
    noise = noise_ref[...]                                         # [B, DP] f32

    # add_noise (f32 elementwise; per-row [B,1] scale broadcasts over lanes)
    noisy = sab_ref[...] * x_ref[...] + s1m_ref[...] * noise       # [B, DP]

    # layer 1: bf16 x bf16 -> f32 accumulate on the MXU
    h = jnp.dot(noisy.astype(jnp.bfloat16), w1_ref[...],
                preferred_element_type=jnp.float32)                # [B, HIDDEN]
    h = jnp.maximum(h + b1_ref[...] + cond_ref[...], 0.0)

    # layer 2
    est = jnp.dot(h.astype(jnp.bfloat16), w2_ref[...],
                  preferred_element_type=jnp.float32) + b2_ref[...]  # [B, DP]

    # MSE over the TRUE element count; padded cols of est and noise are both 0
    d = est - noise
    loss_ref[...] = jnp.sum(d * d, keepdims=True) * (1.0 / float(B * D))


def fused_forward(x_pad, noise_pad, sqrt_ab, sqrt_1mab, cond, params):
    out = pl.pallas_call(
        _fused_diffusion_kernel,
        out_shape=jax.ShapeDtypeStruct((1, 1), jnp.float32),
        in_specs=[_VMEM] * 9,
        out_specs=_VMEM,
    )(x_pad, noise_pad, sqrt_ab, sqrt_1mab, cond,
      params["w1"], params["b1"], params["w2"], params["b2"])
    return out[0, 0]


# ---------------------------------------------------------------------------
# Variance scheduler statistics (pure JAX glue, matches VarianceScheduler)
# ---------------------------------------------------------------------------
def make_scheduler():
    betas = jnp.linspace(BETA_START, BETA_END, NUM_STEPS, dtype=jnp.float32)
    alphas = 1.0 - betas
    alpha_bars = jnp.cumprod(alphas)
    return betas, alphas, alpha_bars


# ---------------------------------------------------------------------------
# Deterministic parameter initialization (synthetic network weights).
# Weights are zero-padded to the lane-dense DP and stored in bfloat16.
# ---------------------------------------------------------------------------
def init_params(key):
    k1, k2, k3, k4 = jax.random.split(key, 4)
    w1 = jax.random.normal(k1, (D, HIDDEN), jnp.float32) * 0.02
    w2 = jax.random.normal(k2, (HIDDEN, D), jnp.float32) * 0.02
    w1_pad = jnp.zeros((DP, HIDDEN), jnp.float32).at[:D, :].set(w1)
    w2_pad = jnp.zeros((HIDDEN, DP), jnp.float32).at[:, :D].set(w2)
    return {
        "w1": w1_pad.astype(jnp.bfloat16),                 # [DP, HIDDEN] bf16
        "b1": jnp.zeros((1, HIDDEN), jnp.float32),
        "w2": w2_pad.astype(jnp.bfloat16),                 # [HIDDEN, DP] bf16
        "b2": jnp.zeros((1, DP), jnp.float32),             # padded cols stay 0
        "t_emb": jax.random.normal(k3, (NUM_STEPS, HIDDEN), jnp.float32) * 0.02,
        "y_emb": jax.random.normal(k4, (NUM_CLASSES, HIDDEN), jnp.float32) * 0.02,
    }


# ---------------------------------------------------------------------------
# DiffusionModel.forward equivalent
# ---------------------------------------------------------------------------
def diffusion_forward(x, y, params, alpha_bars, rng):
    # x: [B, 1, 28, 28] float32, y: [B] int32
    k_t, k_n = jax.random.split(rng)

    # timesteps = torch.randint(0, num_steps, (B,))
    timesteps = jax.random.randint(k_t, (B,), 0, NUM_STEPS)

    # noise = torch.randn_like(x)
    noise = jax.random.normal(k_n, x.shape, jnp.float32)

    # flatten NCHW -> [B, D] and zero-pad the lane dim to DP = 7*128
    pad = ((0, 0), (0, DP - D))
    x_pad = jnp.pad(x.reshape(B, D), pad)
    noise_pad = jnp.pad(noise.reshape(B, D), pad)

    a_bar = alpha_bars[timesteps]                          # [B]
    sqrt_ab = jnp.sqrt(a_bar).reshape(B, 1)                # [B, 1]
    sqrt_1mab = jnp.sqrt(1.0 - a_bar).reshape(B, 1)        # [B, 1]

    # conditioning: time embedding + label embedding (two tiny row gathers;
    # kept in glue so only 2*[HIDDEN] rows move, not the whole 500KB table)
    cond = params["t_emb"][timesteps] + params["y_emb"][y]   # [B, HIDDEN]

    # fused add_noise -> network -> mse (single Pallas kernel, one HBM write)
    return fused_forward(x_pad, noise_pad, sqrt_ab, sqrt_1mab, cond, params)


# ---------------------------------------------------------------------------
if __name__ == "__main__":
    key = jax.random.PRNGKey(0)
    k_params, k_x, k_y, k_fwd = jax.random.split(key, 4)

    params = init_params(k_params)
    _, _, alpha_bars = make_scheduler()

    x = jax.random.normal(k_x, (B, C, H_IMG, W_IMG), jnp.float32)
    y = jax.random.randint(k_y, (B,), 0, NUM_CLASSES)

    loss = diffusion_forward(x, y, params, alpha_bars, k_fwd)
    loss = jax.block_until_ready(loss)
    assert loss.shape == () and jnp.isfinite(loss)
    print("KERNEL_OK")
</pallas_src>

<mosaic_0001>
module attributes {stable_mosaic.version = 11 : i64} {
  func.func @_fused_diffusion_kernel(%arg0: memref<2x896xf32, #tpu.memory_space<vmem>>, %arg1: memref<2x896xf32, #tpu.memory_space<vmem>>, %arg2: memref<2x1xf32, #tpu.memory_space<vmem>>, %arg3: memref<2x1xf32, #tpu.memory_space<vmem>>, %arg4: memref<2x128xf32, #tpu.memory_space<vmem>>, %arg5: memref<896x128xbf16, #tpu.memory_space<vmem>>, %arg6: memref<1x128xf32, #tpu.memory_space<vmem>>, %arg7: memref<128x896xbf16, #tpu.memory_space<vmem>>, %arg8: memref<1x896xf32, #tpu.memory_space<vmem>>, %arg9: memref<1x1xf32, #tpu.memory_space<vmem>>) attributes {dimension_semantics = [], scalar_prefetch = 0 : i64, scratch_operands = 0 : i64, tpu.core_type = #tpu.core_type<tc>} {
    %c0 = arith.constant 0 : index
    %c0_0 = arith.constant 0 : index
    %0 = vector.load %arg1[%c0, %c0_0] : memref<2x896xf32, #tpu.memory_space<vmem>>, vector<2x896xf32>
    %c0_1 = arith.constant 0 : index
    %c0_2 = arith.constant 0 : index
    %1 = vector.load %arg2[%c0_1, %c0_2] : memref<2x1xf32, #tpu.memory_space<vmem>>, vector<2x1xf32>
    %c0_3 = arith.constant 0 : index
    %c0_4 = arith.constant 0 : index
    %2 = vector.load %arg0[%c0_3, %c0_4] : memref<2x896xf32, #tpu.memory_space<vmem>>, vector<2x896xf32>
    %3 = vector.broadcast %1 : vector<2x1xf32> to vector<2x896xf32>
    %4 = arith.mulf %3, %2 : vector<2x896xf32>
    %c0_5 = arith.constant 0 : index
    %c0_6 = arith.constant 0 : index
    %5 = vector.load %arg3[%c0_5, %c0_6] : memref<2x1xf32, #tpu.memory_space<vmem>>, vector<2x1xf32>
    %6 = vector.broadcast %5 : vector<2x1xf32> to vector<2x896xf32>
    %7 = arith.mulf %6, %0 : vector<2x896xf32>
    %8 = arith.addf %4, %7 : vector<2x896xf32>
    %9 = arith.truncf %8 : vector<2x896xf32> to vector<2x896xbf16>
    %c0_7 = arith.constant 0 : index
    %c0_8 = arith.constant 0 : index
    %10 = vector.load %arg5[%c0_7, %c0_8] : memref<896x128xbf16, #tpu.memory_space<vmem>>, vector<896x128xbf16>
    %cst = arith.constant dense<0.000000e+00> : vector<2x128xf32>
    %11 = tpu.matmul %9, %10, %cst {dimension_numbers = #tpu.dot_dimension_numbers<[1], [0], [0], [1], [0, 0, 1, 1], [], []>} : vector<2x896xbf16>, vector<896x128xbf16>, vector<2x128xf32> -> vector<2x128xf32>
    %c0_9 = arith.constant 0 : index
    %c0_10 = arith.constant 0 : index
    %12 = vector.load %arg6[%c0_9, %c0_10] : memref<1x128xf32, #tpu.memory_space<vmem>>, vector<1x128xf32>
    %13 = vector.broadcast %12 : vector<1x128xf32> to vector<2x128xf32>
    %14 = arith.addf %11, %13 : vector<2x128xf32>
    %c0_11 = arith.constant 0 : index
    %c0_12 = arith.constant 0 : index
    %15 = vector.load %arg4[%c0_11, %c0_12] : memref<2x128xf32, #tpu.memory_space<vmem>>, vector<2x128xf32>
    %16 = arith.addf %14, %15 : vector<2x128xf32>
    %cst_13 = arith.constant 0.000000e+00 : f32
    %17 = vector.broadcast %cst_13 : f32 to vector<2x128xf32>
    %18 = arith.maximumf %16, %17 : vector<2x128xf32>
    %19 = arith.truncf %18 : vector<2x128xf32> to vector<2x128xbf16>
    %c0_14 = arith.constant 0 : index
    %c0_15 = arith.constant 0 : index
    %20 = vector.load %arg7[%c0_14, %c0_15] : memref<128x896xbf16, #tpu.memory_space<vmem>>, vector<128x896xbf16>
    %cst_16 = arith.constant dense<0.000000e+00> : vector<2x896xf32>
    %21 = tpu.matmul %19, %20, %cst_16 {dimension_numbers = #tpu.dot_dimension_numbers<[1], [0], [0], [1], [0, 0, 1, 1], [], []>} : vector<2x128xbf16>, vector<128x896xbf16>, vector<2x896xf32> -> vector<2x896xf32>
    %c0_17 = arith.constant 0 : index
    %c0_18 = arith.constant 0 : index
    %22 = vector.load %arg8[%c0_17, %c0_18] : memref<1x896xf32, #tpu.memory_space<vmem>>, vector<1x896xf32>
    %23 = vector.broadcast %22 : vector<1x896xf32> to vector<2x896xf32>
    %24 = arith.addf %21, %23 : vector<2x896xf32>
    %25 = arith.subf %24, %0 : vector<2x896xf32>
    %26 = arith.mulf %25, %25 : vector<2x896xf32>
    %27 = vector.shape_cast %26 : vector<2x896xf32> to vector<1x2x896xf32>
    %cst_19 = arith.constant dense<0.000000e+00> : vector<1xf32>
    %28 = vector.multi_reduction <add>, %27, %cst_19 [1, 2] : vector<1x2x896xf32> to vector<1xf32>
    %29 = vector.shape_cast %28 : vector<1xf32> to vector<1x1x1xf32>
    %30 = vector.extract %29[0, 0, 0] : f32 from vector<1x1x1xf32>
    %31 = vector.broadcast %30 : f32 to vector<1x1xf32>
    %cst_20 = arith.constant 6.37755089E-4 : f32
    %32 = vector.broadcast %cst_20 : f32 to vector<1x1xf32>
    %33 = arith.mulf %31, %32 : vector<1x1xf32>
    %c0_21 = arith.constant 0 : index
    %c0_22 = arith.constant 0 : index
    %34 = vector.load %arg9[%c0_21, %c0_22] : memref<1x1xf32, #tpu.memory_space<vmem>>, vector<1x1xf32>
    tpu.vector_store %arg9[%c0_21, %c0_22], %33 {strides = array<i32>} : memref<1x1xf32, #tpu.memory_space<vmem>>, vector<1x1xf32>,
    return
  }
}

</mosaic_0001>

<bundles_post_ra>
// kernel: tpu_custom_call.1
= control target key start
LH: loop header
LB: loop body
LE: loop exit
PB: predicated region body
PF: predicated region fallthrough
CT: control target
= control target key end

     0   :  { %14 = vsyncpa [#allocation3], 0  ;;  %s2134_s0 = inlined_call_operand.hbm [shape: f32[2,896], index: 0, kind: input, shape index: {}]   ;;  %s2135_s1 = inlined_call_operand.hbm [shape: f32[2,896], index: 1, kind: input, shape index: {}]   ;;  %s2136_s2 = inlined_call_operand.vmem [shape: f32[2,1], index: 2, kind: input, shape index: {}]   ;;  %s2137_s3 = inlined_call_operand.vmem [shape: f32[2,1], index: 3, kind: input, shape index: {}]   ;;  %s2138_s4 = inlined_call_operand.vmem [shape: f32[2,128], index: 4, kind: input, shape index: {}]   ;;  %s2139_s5 = inlined_call_operand.hbm [shape: bf16[896,128], index: 5, kind: input, shape index: {}]   ;;  %s2140_s6 = inlined_call_operand.vmem [shape: f32[1,128], index: 6, kind: input, shape index: {}]   ;;  %s2141_s7 = inlined_call_operand.hbm [shape: bf16[128,896], index: 7, kind: input, shape index: {}]   ;;  %s2142_s8 = inlined_call_operand.hbm [shape: f32[1,896], index: 8, kind: input, shape index: {}]   ;;  %s2143_s9 = inlined_call_operand.hbm [shape: f32[1,1], index: 9, kind: output, shape index: {}]  }
   0x1   :  { %15 = vsyncpa [#allocation6], 0 }
   0x2   :  { %16 = vsyncpa [#allocation9], 0  ;;  %s34_s11 = sshll.u32 %s2135_s1, 4  ;;  %s35_s11 = int_to_ptr.hbm [resolvable:$true] %s34_s11 }
   0x3   :  { %17 = vsyncpa [#allocation4], 0  ;;  %s1997_s12 = smov [#allocation5]   ;;  %s65_s16 = sshll.u32 %s2141_s7, 4  ;;  %s66_s16 = int_to_ptr.hbm [resolvable:$true] %s65_s16 }
   0x4   :  { %s36_s13 = sshll.u32 %s1997_s12, 4  ;;  %s1998_s17 = smov [#allocation8]   ;;  %s37_s13 = int_to_ptr.vmem [resolvable:$true] %s36_s13 }
   0x5   :  { %39 = dma.hbm_to_vmem [thread:$0]  %s35_s11, 224, %s37_s13, [#allocation6]  }
   0x6   :  { %s67_s18 = sshll.u32 %s1998_s17, 4  ;;  %s1999_s19 = smov 448   ;;  %s68_s18 = int_to_ptr.vmem [resolvable:$true] %s67_s18 }
   0x7   :  { %s2000_s20 = smov 28   ;;  %s23_s1 = sshll.u32 %s2134_s0, 4  ;;  %s24_s1 = int_to_ptr.hbm [resolvable:$true] %s23_s1 }
   0x8   :  { %73 = dma.hbm_to_vmem [thread:$0]  %s66_s16, 7168, %s68_s18, [#allocation9], %s1999_s19, %s1999_s19, %s2000_s20  }
   0x9   :  { %s2001_s23 = smov [#allocation2]   ;;  %s50_s7 = sshll.u32 %s2139_s5, 4  ;;  %s51_s7 = int_to_ptr.hbm [resolvable:$true] %s50_s7 }
   0xa   :  { %s25_s24 = sshll.u32 %s2001_s23, 4  ;;  %s2002_s27 = smov [#allocation7]   ;;  %s26_s24 = int_to_ptr.vmem [resolvable:$true] %s25_s24 }
   0xb   :  { %28 = dma.hbm_to_vmem [thread:$0]  %s24_s1, 224, %s26_s24, [#allocation3]  }
   0xc   :  { %s52_s28 = sshll.u32 %s2002_s27, 4  ;;  %s2003_s29 = smov 64   ;;  %s53_s28 = int_to_ptr.vmem [resolvable:$true] %s52_s28 }
   0xd   :  { %s2004_s30 = smov 4   ;;  %s79_s0 = sshll.u32 %s2142_s8, 4  ;;  %s80_s0 = int_to_ptr.hbm [resolvable:$true] %s79_s0 }
   0xe   :  { %58 = dma.hbm_to_vmem [thread:$0]  %s51_s7, 7168, %s53_s28, [#allocation6], %s2003_s29, %s2003_s29, %s2004_s30  }
   0xf   :  { %s2005_s12 = smov [#allocation10]  }
  0x10   :  { %s81_s13 = sshll.u32 %s2005_s12, 4  ;;  %s82_s13 = int_to_ptr.vmem [resolvable:$true] %s81_s13 }
  0x11   :  { %84 = dma.hbm_to_vmem [thread:$0]  %s80_s0, 112, %s82_s13, [#allocation9]  }
  0x12   :  { %1989 = dma.done.wait [#allocation3], 224  }
  0x13   :  { %1990 = vsyncadd [#allocation3], 4294967072 }
  0x14   :  { %1991 = dma.done.wait [#allocation6], 7392  }
  0x15   :  { %1992 = vsyncadd [#allocation6], 4294959904 }
  0x16   :  { %1993 = dma.done.wait [#allocation9], 7280  }
  0x17   :  { %1994 = vsyncadd [#allocation9], 4294960016  ;;  %v2006_v0 = vmov 0   ;;  %v107_v1 = vld [vmem:[%s2136_s2] sm:$0x3]  ;;  %v1724_v5 = vld [vmem:[#allocation7 + $0x30] sm:$0xff] }
  0x18   :  { %1843 = vset.pattern.permute.xlu0 %v2006_v0  ;;  %v1725_v2 = vld [vmem:[#allocation7 + $0x38] sm:$0xff]  ;;  %v1732_v6 = vld [vmem:[#allocation7 + $0x70] sm:$0xff]  ;;  %v1723_v10 = vld [vmem:[#allocation7 + $0x28] sm:$0xff]  ;;  %vm1224_vm0 = vcmask 1041408   ;;  %s1258_s20 = sshll.u32 %s2143_s9, 4  ;;  %vm1249_vm1 = vcmask 0   ;;  %s1259_s20 = int_to_ptr.hbm [resolvable:$true] %s1258_s20 }
  0x19   :  { %112 = vperm.xlu0 %1843, %v107_v1   ;;  %v1733_v3 = vld [vmem:[#allocation7 + $0x78] sm:$0xff]  ;;  %639 = vmatpush.bf16.msra.mxu0 %v1725_v2  ;;  %v1740_v7 = vld [vmem:[#allocation7 + $0xb0] sm:$0xff]  ;;  %v1731_v12 = vld [vmem:[#allocation7 + $0x68] sm:$0xff] }
  0x1a   :  { %v1741_v4 = vld [vmem:[#allocation7 + $0xb8] sm:$0xff]  ;;  %652 = vmatpush.bf16.msra.mxu1 %v1733_v3  ;;  %v1748_v11 = vld [vmem:[#allocation7 + $0xf0] sm:$0xff]  ;;  %v1739_v13 = vld [vmem:[#allocation7 + $0xa8] sm:$0xff] }
  0x1b   :  { %665 = vmatpush.bf16.msra.mxu2 %v1741_v4  ;;  %v1749_v8 = vld [vmem:[#allocation7 + $0xf8] sm:$0xff]  ;;  %v1722_v14 = vld [vmem:[#allocation7 + $0x20] sm:$0xff]  ;;  %v1747_v15 = vld [vmem:[#allocation7 + $0xe8] sm:$0xff] }
  0x1c   :  { %v141_v9 = vld [vmem:[%s2137_s3] sm:$0x3]  ;;  %678 = vmatpush.bf16.msra.mxu3 %v1749_v8  ;;  %v1730_v16 = vld [vmem:[#allocation7 + $0x60] sm:$0xff]  ;;  %v1720_v22 = vld [vmem:[#allocation7 + $0x10] sm:$0xff] }
  0x1d   :  { %640 = vmatpush.bf16.msra.mxu0 %v1724_v5  ;;  %v1738_v17 = vld [vmem:[#allocation7 + $0xa0] sm:$0xff]  ;;  %v1721_v18 = vld [vmem:[#allocation7 + $0x18] sm:$0xff]  ;;  %v1728_v24 = vld [vmem:[#allocation7 + $0x50] sm:$0xff] }
  0x1e   :  { %653 = vmatpush.bf16.msra.mxu1 %v1732_v6  ;;  %v1746_v19 = vld [vmem:[#allocation7 + $0xe0] sm:$0xff]  ;;  %v1729_v20 = vld [vmem:[#allocation7 + $0x58] sm:$0xff]  ;;  %v1736_v25 = vld [vmem:[#allocation7 + $0x90] sm:$0xff] }
  0x1f   :  { %666 = vmatpush.bf16.msra.mxu2 %v1740_v7  ;;  %v1737_v21 = vld [vmem:[#allocation7 + $0x98] sm:$0xff]  ;;  %v1719_v26 = vld [vmem:[#allocation7 + $0x8] sm:$0xff]  ;;  %v1718_v29 = vld [vmem:[#allocation7] sm:$0xff] }
  0x20   :  { %679 = vmatpush.bf16.msra.mxu3 %v1748_v11  ;;  %v1745_v23 = vld [vmem:[#allocation7 + $0xd8] sm:$0xff]  ;;  %v1727_v27 = vld [vmem:[#allocation7 + $0x48] sm:$0xff]  ;;  %v1726_v30 = vld [vmem:[#allocation7 + $0x40] sm:$0xff] }
  0x21   :  { %144 = vperm.xlu0 %1843, %v141_v9   ;;  %641 = vmatpush.bf16.msra.mxu0 %v1723_v10  ;;  %v1735_v28 = vld [vmem:[#allocation7 + $0x88] sm:$0xff]  ;;  %v1734_v31 = vld [vmem:[#allocation7 + $0x80] sm:$0xff]  ;;  %v1757_v32 = vld [vmem:[#allocation7 + $0x138] sm:$0xff] }
  0x22   :  { %654 = vmatpush.bf16.msra.mxu1 %v1731_v12  ;;  %v1765_v33 = vld [vmem:[#allocation7 + $0x178] sm:$0xff]  ;;  %v108_v35 = vld [vmem:[#allocation2] sm:$0xff]  ;;  %v109_v36 = vld [vmem:[#allocation2 + $0x8] sm:$0x3f] }
  0x23   :  { %667 = vmatpush.bf16.msra.mxu2 %v1739_v13  ;;  %v1773_v34 = vld [vmem:[#allocation7 + $0x1b8] sm:$0xff]  ;;  %117 = vst [vmem:[#allocation1] ss:$4 sm:$0xff] %v108_v35  ;;  %v1744_v37 = vld [vmem:[#allocation7 + $0xd0] sm:$0xff]  ;;  %v1743_v41 = vld [vmem:[#allocation7 + $0xc8] sm:$0xff] }
  0x24   :  { %680 = vmatpush.bf16.msra.mxu3 %v1747_v15  ;;  %119 = vst [vmem:[#allocation1 + $0x20] ss:$4 sm:$0xff] %v109_v36  ;;  %v1756_v38 = vld [vmem:[#allocation7 + $0x130] sm:$0xff]  ;;  %v1755_v42 = vld [vmem:[#allocation7 + $0x128] sm:$0xff]  ;;  %v106_v50 = vld [vmem:[#allocation5 + $0x8] sm:$0x3f] }
  0x25   :  { %642 = vmatpush.bf16.msra.mxu0 %v1722_v14  ;;  %v1764_v39 = vld [vmem:[#allocation7 + $0x170] sm:$0xff]  ;;  %v1763_v43 = vld [vmem:[#allocation7 + $0x168] sm:$0xff]  ;;  %v1742_v54 = vld [vmem:[#allocation7 + $0xc0] sm:$0xff] }
  0x26   :  { %655 = vmatpush.bf16.msra.mxu1 %v1730_v16  ;;  %v1772_v40 = vld [vmem:[#allocation7 + $0x1b0] sm:$0xff]  ;;  %v1771_v44 = vld [vmem:[#allocation7 + $0x1a8] sm:$0xff]  ;;  %v1754_v55 = vld [vmem:[#allocation7 + $0x120] sm:$0xff] }
  0x27   :  { %668 = vmatpush.bf16.msra.mxu2 %v1738_v17  ;;  %v105_v45 = vld [vmem:[#allocation5] sm:$0xff]  ;;  %v1762_v56 = vld [vmem:[#allocation7 + $0x160] sm:$0xff]  ;;  %v1751_v7 = vld [vmem:[#allocation7 + $0x108] sm:$0xff] }
  0x28   :  { %681 = vmatpush.bf16.msra.mxu3 %v1746_v19  ;;  %v1770_v57 = vld [vmem:[#allocation7 + $0x1a0] sm:$0xff]  ;;  %v1753_v62 = vld [vmem:[#allocation7 + $0x118] sm:$0xff]  ;;  %v1752_v1 = vld [vmem:[#allocation7 + $0x110] sm:$0xff] }
  0x29   :  { %643 = vmatpush.bf16.msra.mxu0 %v1721_v18  ;;  %v1761_v63 = vld [vmem:[#allocation7 + $0x158] sm:$0xff]  ;;  %v1760_v2 = vld [vmem:[#allocation7 + $0x150] sm:$0xff]  ;;  %v1759_v8 = vld [vmem:[#allocation7 + $0x148] sm:$0xff] }
  0x2a   :  { %656 = vmatpush.bf16.msra.mxu1 %v1729_v20  ;;  %v2079_v46 = vld.sshfl [vmem:[#allocation1] sm:$0xff pattern:$0x73625140]  ;;  %v2081_v47 = vld.sshfl [vmem:[#allocation1 + $0x8] sm:$0xff pattern:$0x73625140] }
  0x2b   :  { %669 = vmatpush.bf16.msra.mxu2 %v1737_v21  ;;  %v2083_v48 = vld.sshfl [vmem:[#allocation1 + $0x10] sm:$0xff pattern:$0x73625140]  ;;  %v2085_v49 = vld.sshfl [vmem:[#allocation1 + $0x18] sm:$0xff pattern:$0x73625140] }
  0x2c   :  { %682 = vmatpush.bf16.msra.mxu3 %v1745_v23  ;;  %149 = vst [vmem:[#allocation1] ss:$4 sm:$0xff] %v105_v45  ;;  %v2087_v51 = vld.sshfl [vmem:[#allocation1 + $0x20] sm:$0xff pattern:$0x73625140]  ;;  %v1768_v3 = vld [vmem:[#allocation7 + $0x190] sm:$0xff] }
  0x2d   :  { %644 = vmatpush.bf16.msra.mxu0 %v1720_v22  ;;  %v2089_v52 = vld.sshfl [vmem:[#allocation1 + $0x28] sm:$0xff pattern:$0x73625140]  ;;  %v2091_v53 = vld.sshfl [vmem:[#allocation1 + $0x30] sm:$0xff pattern:$0x73625140] }
  0x2e   :  { %657 = vmatpush.bf16.msra.mxu1 %v1728_v24  ;;  %151 = vst [vmem:[#allocation1 + $0x20] ss:$4 sm:$0xff] %v106_v50  ;;  %v1769_v0 = vld [vmem:[#allocation7 + $0x198] sm:$0xff]  ;;  %v1767_v9 = vld [vmem:[#allocation7 + $0x188] sm:$0xff]  ;;  %v1750_v10 = vld [vmem:[#allocation7 + $0x100] sm:$0xff] }
  0x2f   :  { %670 = vmatpush.bf16.msra.mxu2 %v1736_v25  ;;  %v1758_v11 = vld [vmem:[#allocation7 + $0x140] sm:$0xff]  ;;  %v1692_v14 = vld [vmem:[#allocation8 + $0x188] sm:$0xf]  ;;  %v1664_v17 = vld [vmem:[#allocation8 + $0x150] sm:$0xf] }
  0x30   :  { %683 = vmatpush.bf16.msra.mxu3 %v1744_v37  ;;  %v1766_v12 = vld [vmem:[#allocation7 + $0x180] sm:$0xff]  ;;  %v1819_v18 = vld [vmem:[#allocation8 + $0x168] sm:$0xf0]  ;;  %v1636_v20 = vld [vmem:[#allocation8 + $0x118] sm:$0xf] }
  0x31   :  { %645 = vmatpush.bf16.msra.mxu0 %v1719_v26  ;;  %v1826_v15 = vld [vmem:[#allocation8 + $0x1a0] sm:$0xf0]  ;;  %v1665_v19 = vor.u32 %v1819_v18, %v1664_v17  ;;  %v1812_v21 = vld [vmem:[#allocation8 + $0x130] sm:$0xf0]  ;;  %v1827_v35 = vld [vmem:[#allocation8 + $0x1a8] sm:$0xf0] }
  0x32   :  { %658 = vmatpush.bf16.msra.mxu1 %v1727_v27  ;;  %v1693_v16 = vor.u32 %v1826_v15, %v1692_v14  ;;  %v1823_v27 = vld [vmem:[#allocation8 + $0x18c] sm:$0xf] }
  0x33   :  { %671 = vmatpush.bf16.msra.mxu2 %v1735_v28  ;;  %v152_v58 = vld.sshfl [vmem:[#allocation1] sm:$0xff pattern:$0x73625140]  ;;  %v153_v59 = vld.sshfl [vmem:[#allocation1 + $0x8] sm:$0xff pattern:$0x73625140]  ;;  %v1637_v28 = vor.u32 %v1812_v21, %v1636_v20 }
  0x34   :  { %684 = vmatpush.bf16.msra.mxu3 %v1743_v41  ;;  %v154_v60 = vld.sshfl [vmem:[#allocation1 + $0x10] sm:$0xff pattern:$0x73625140]  ;;  %v155_v61 = vld.sshfl [vmem:[#allocation1 + $0x18] sm:$0xff pattern:$0x73625140] }
  0x35   :  { %646 = vmatpush.bf16.msra.mxu0 %v1718_v29  ;;  %1193 = vst [vmem:[#allocation1] ss:$4 sm:$0xff] %v105_v45  ;;  %v2093_v4 = vld.sshfl [vmem:[#allocation1 + $0x20] sm:$0xff pattern:$0x73625140] }
  0x36   :  { %659 = vmatpush.bf16.msra.mxu1 %v1726_v30  ;;  %v2095_v5 = vld.sshfl [vmem:[#allocation1 + $0x28] sm:$0xff pattern:$0x73625140]  ;;  %v2097_v6 = vld.sshfl [vmem:[#allocation1 + $0x30] sm:$0xff pattern:$0x73625140] }
  0x37   :  { %672 = vmatpush.bf16.msra.mxu2 %v1734_v31  ;;  %1195 = vst [vmem:[#allocation1 + $0x20] ss:$4 sm:$0xff] %v106_v50  ;;  %v1805_v41 = vld [vmem:[#allocation8 + $0xf8] sm:$0xf0]  ;;  %v1672_v50 = vld [vmem:[#allocation8 + $0x158] sm:$0xf] }
  0x38   :  { %685 = vmatpush.bf16.msra.mxu3 %v1742_v54  ;;  %v1820_v54 = vld [vmem:[#allocation8 + $0x170] sm:$0xf0]  ;;  %v1795_v20 = vld [vmem:[#allocation8 + $0xac] sm:$0xf] }
  0x39   :  { %691 = vmatpush.bf16.msrb.mxu0 %v1757_v32 }
  0x3a   :  { %704 = vmatpush.bf16.msrb.mxu1 %v1765_v33  ;;  %v1694_v33 = vld [vmem:[#allocation8 + $0x1a4] sm:$0xf0] }
  0x3b   :  { %717 = vmatpush.bf16.msrb.mxu2 %v1773_v34  ;;  %v1700_v34 = vld [vmem:[#allocation8 + $0x190] sm:$0xf] }
  0x3c   :  { %1102 = vmatpush.bf16.msrb.mxu3 %v1693_v16 }
  0x3d   :  { %692 = vmatpush.bf16.msrb.mxu0 %v1756_v38 }
  0x3e   :  { %705 = vmatpush.bf16.msrb.mxu1 %v1764_v39 }
  0x3f   :  { %718 = vmatpush.bf16.msrb.mxu2 %v1772_v40  ;;  %v1608_v40 = vld [vmem:[#allocation8 + $0xe0] sm:$0xf] }
  0x40   :  { %1103 = vmatpush.bf16.msrb.mxu3 %v1665_v19 }
  0x41   :  { %693 = vmatpush.bf16.msrb.mxu0 %v1755_v42  ;;  %v1697_v42 = vor.u32 %v1823_v27, %v1694_v33  ;;  %v1817_v27 = vld [vmem:[#allocation8 + $0x15c] sm:$0xf] }
  0x42   :  { %706 = vmatpush.bf16.msrb.mxu1 %v1763_v43  ;;  %v1701_v43 = vor.u32 %v1827_v35, %v1700_v34  ;;  %v1554_v34 = vld [vmem:[#allocation8 + $0x8c] sm:$0xf0]  ;;  %v1560_v35 = vld [vmem:[#allocation8 + $0x78] sm:$0xf] }
  0x43   :  { %719 = vmatpush.bf16.msrb.mxu2 %v1771_v44 }
  0x44   :  { %1104 = vmatpush.bf16.msrb.mxu3 %v1637_v28  ;;  %v1674_v28 = vld [vmem:[#allocation8 + $0x174] sm:$0xf0] }
  0x45   :  { %694 = vmatpush.bf16.msrb.mxu0 %v1754_v55  ;;  %v1609_v55 = vor.u32 %v1805_v41, %v1608_v40  ;;  %v1646_v40 = vld [vmem:[#allocation8 + $0x13c] sm:$0xf0] }
  0x46   :  { %707 = vmatpush.bf16.msrb.mxu1 %v1762_v56 }
  0x47   :  { %720 = vmatpush.bf16.msrb.mxu2 %v1770_v57  ;;  %v1673_v57 = vor.u32 %v1820_v54, %v1672_v50  ;;  %v1803_v54 = vld [vmem:[#allocation8 + $0xec] sm:$0xf] }
  0x48   :  { %1105 = vmatpush.bf16.msrb.mxu3 %v1609_v55  ;;  %v1618_v55 = vld [vmem:[#allocation8 + $0x104] sm:$0xf0] }
  0x49   :  { %695 = vmatpush.bf16.msrb.mxu0 %v1753_v62 }
  0x4a   :  { %708 = vmatpush.bf16.msrb.mxu1 %v1761_v63 }
  0x4b   :  { %721 = vmatpush.bf16.msrb.mxu2 %v1769_v0 }
  0x4d   :  { %696 = vmatpush.bf16.msrb.mxu0 %v1752_v1 }
  0x4e   :  { %709 = vmatpush.bf16.msrb.mxu1 %v1760_v2  ;;  %v1802_v2 = vld [vmem:[#allocation8 + $0xe4] sm:$0xf] }
  0x4f   :  { %722 = vmatpush.bf16.msrb.mxu2 %v1768_v3  ;;  %v1610_v3 = vld [vmem:[#allocation8 + $0xfc] sm:$0xf0] }
  0x51   :  { %697 = vmatpush.bf16.msrb.mxu0 %v1751_v7 }
  0x52   :  { %710 = vmatpush.bf16.msrb.mxu1 %v1759_v8  ;;  %v1616_v8 = vld [vmem:[#allocation8 + $0xe8] sm:$0xf] }
  0x53   :  { %723 = vmatpush.bf16.msrb.mxu2 %v1767_v9  ;;  %v1806_v9 = vld [vmem:[#allocation8 + $0x100] sm:$0xf0] }
  0x54   :  { %v1617_v15 = vor.u32 %v1806_v9, %v1616_v8  ;;  %v1828_v9 = vld [vmem:[#allocation8 + $0x1b0] sm:$0xf0] }
  0x55   :  { %698 = vmatpush.bf16.msrb.mxu0 %v1750_v10 }
  0x56   :  { %711 = vmatpush.bf16.msrb.mxu1 %v1758_v11 }
  0x57   :  { %724 = vmatpush.bf16.msrb.mxu2 %v1766_v12  ;;  %v1613_v12 = vor.u32 %v1802_v2, %v1610_v3  ;;  %v1796_v2 = vld [vmem:[#allocation8 + $0xb4] sm:$0xf]  ;;  %v1590_v3 = vld [vmem:[#allocation8 + $0xcc] sm:$0xf0] }
  0x58   :  { %v1593_v8 = vor.u32 %v1796_v2, %v1590_v3  ;;  %v1576_v2 = vld [vmem:[#allocation8 + $0x88] sm:$0xf]  ;;  %v1794_v3 = vld [vmem:[#allocation8 + $0xa0] sm:$0xf0] }
  0x8b   :  { %v2099_v13 = vpop.permute.xlu0 %112 }
  0x8c   :  { %v134_v22 = vmul.f32 %v2079_v46, %v2099_v13  ;;  %v135_v24 = vmul.f32 %v2081_v47, %v2099_v13  ;;  %v136_v25 = vmul.f32 %v2083_v48, %v2099_v13  ;;  %v137_v26 = vmul.f32 %v2085_v49, %v2099_v13  ;;  %v1816_v48 = vld [vmem:[#allocation8 + $0x154] sm:$0xf]  ;;  %v1666_v49 = vld [vmem:[#allocation8 + $0x16c] sm:$0xf0] }
  0x8d   :  { %v1669_v56 = vor.u32 %v1816_v48, %v1666_v49  ;;  %v138_v10 = vmul.f32 %v2087_v51, %v2099_v13  ;;  %v139_v11 = vmul.f32 %v2089_v52, %v2099_v13  ;;  %v1824_v51 = vld [vmem:[#allocation8 + $0x194] sm:$0xf]  ;;  %v1702_v52 = vld [vmem:[#allocation8 + $0x1ac] sm:$0xf0]  ;;  %v1785_v48 = vld [vmem:[#allocation8 + $0x58] sm:$0xf0] }
  0x8e   :  { %v1705_v19 = vor.u32 %v1824_v51, %v1702_v52  ;;  %v1821_v51 = vld [vmem:[#allocation8 + $0x178] sm:$0xf0]  ;;  %v1818_v52 = vld [vmem:[#allocation8 + $0x164] sm:$0xf] }
  0x93   :  { %v145_v23 = vpop.permute.xlu0 %144 }
  0x94   :  { %v166_v29 = vmul.f32 %v152_v58, %v145_v23  ;;  %v167_v30 = vmul.f32 %v153_v59, %v145_v23  ;;  %v168_v31 = vmul.f32 %v154_v60, %v145_v23  ;;  %v169_v32 = vmul.f32 %v155_v61, %v145_v23  ;;  %v1809_v58 = vld [vmem:[#allocation8 + $0x11c] sm:$0xf]  ;;  %v1638_v59 = vld [vmem:[#allocation8 + $0x134] sm:$0xf0]  ;;  %v1644_v60 = vld [vmem:[#allocation8 + $0x120] sm:$0xf] }
  0x95   :  { %v1813_v61 = vld [vmem:[#allocation8 + $0x138] sm:$0xf0]  ;;  %v1641_v62 = vor.u32 %v1809_v58, %v1638_v59  ;;  %v170_v63 = vmul.f32 %v2093_v4, %v145_v23  ;;  %v171_v0 = vmul.f32 %v2095_v5, %v145_v23  ;;  %v172_v7 = vmul.f32 %v2097_v6, %v145_v23  ;;  %v1588_v23 = vld [vmem:[#allocation8 + $0xb0] sm:$0xf]  ;;  %v1774_v59 = vld [vmem:[#allocation8 + $0x4] sm:$0xf] }
  0x96   :  { %v173_v36 = vadd.f32 %v166_v29, %v134_v22  ;;  %v174_v37 = vadd.f32 %v167_v30, %v135_v24  ;;  %v175_v38 = vadd.f32 %v168_v31, %v136_v25  ;;  %v176_v39 = vadd.f32 %v169_v32, %v137_v26  ;;  %v1582_v22 = vld [vmem:[#allocation8 + $0xc4] sm:$0xf0]  ;;  %v1799_v24 = vld [vmem:[#allocation8 + $0xc8] sm:$0xf0]  ;;  %v1552_v30 = vld [vmem:[#allocation8 + $0x70] sm:$0xf] }
  0x97   :  { %v1645_v1 = vor.u32 %v1813_v61, %v1644_v60  ;;  %v140_v4 = vmul.f32 %v2091_v53, %v2099_v13  ;;  %v177_v5 = vadd.f32 %v170_v63, %v138_v10  ;;  %v178_v14 = vadd.f32 %v171_v0, %v139_v11  ;;  %v1580_v53 = vld [vmem:[#allocation8 + $0xa8] sm:$0xf]  ;;  %v1798_v13 = vld [vmem:[#allocation8 + $0xc0] sm:$0xf0]  ;;  %v1791_v31 = vld [vmem:[#allocation8 + $0x88] sm:$0xf0] }
  0x98   :  { %v180_v44 = vpack.c.bf16 %v173_v36, %v173_v36  ;;  %v181_v45 = vpack.c.bf16 %v174_v37, %v174_v37  ;;  %v182_v46 = vpack.c.bf16 %v175_v38, %v175_v38  ;;  %v183_v47 = vpack.c.bf16 %v176_v39, %v176_v39  ;;  %v1788_v32 = vld [vmem:[#allocation8 + $0x74] sm:$0xf]  ;;  %v1810_v39 = vld [vmem:[#allocation8 + $0x124] sm:$0xf]  ;;  %v1777_v58 = vld [vmem:[#allocation8 + $0x18] sm:$0xf0] }
  0x99   :  { %v179_v16 = vadd.f32 %v172_v7, %v140_v4  ;;  %v184_v17 = vpack.c.bf16 %v177_v5, %v177_v5  ;;  %v185_v6 = vpack.c.bf16 %v178_v14, %v178_v14  ;;  %v1581_v21 = vor.u32 %v1798_v13, %v1580_v53  ;;  %v1792_v36 = vld [vmem:[#allocation8 + $0x90] sm:$0xf0]  ;;  %v1498_v61 = vld [vmem:[#allocation8 + $0x1c] sm:$0xf0]  ;;  %v1778_v63 = vld [vmem:[#allocation8 + $0x20] sm:$0xf0] }
  0x9a   :  { %647 = vmatmul.bf16.vlgmr.msra.gmra.mxu0 %v180_v44  ;;  %660 = vmatmul.bf16.vlgmr.msra.gmra.mxu1 %v181_v45  ;;  %v1585_v25 = vor.u32 %v1795_v20, %v1582_v22  ;;  %v1589_v26 = vor.u32 %v1799_v24, %v1588_v23  ;;  %v1677_v29 = vor.u32 %v1817_v27, %v1674_v28  ;;  %v1781_v44 = vld [vmem:[#allocation8 + $0x3c] sm:$0xf]  ;;  %v1708_v7 = vld [vmem:[#allocation8 + $0x198] sm:$0xf]  ;;  %v1716_v5 = vld [vmem:[#allocation8 + $0x1a0] sm:$0xf] }
  0x9b   :  { %673 = vmatmul.bf16.vlgmr.msra.gmra.mxu2 %v182_v46  ;;  %686 = vmatmul.bf16.vlgmr.msra.gmra.mxu3 %v183_v47  ;;  %v186_v18 = vpack.c.bf16 %v179_v16, %v179_v16  ;;  %v1553_v33 = vor.u32 %v1791_v31, %v1552_v30  ;;  %v1557_v37 = vor.u32 %v1788_v32, %v1554_v34  ;;  %v1526_v46 = vld [vmem:[#allocation8 + $0x54] sm:$0xf0]  ;;  %v1532_v47 = vld [vmem:[#allocation8 + $0x40] sm:$0xf]  ;;  %v1825_v10 = vld [vmem:[#allocation8 + $0x19c] sm:$0xf] }
  0x9c   :  { %1115 = vmatpush.bf16.msra.mxu0 %v1697_v42  ;;  %1128 = vmatpush.bf16.msra.mxu1 %v1701_v43  ;;  %v1561_v38 = vor.u32 %v1792_v36, %v1560_v35  ;;  %v1649_v41 = vor.u32 %v1810_v39, %v1646_v40  ;;  %v1524_v42 = vld [vmem:[#allocation8 + $0x38] sm:$0xf]  ;;  %v1784_v43 = vld [vmem:[#allocation8 + $0x50] sm:$0xf0]  ;;  %v1529_v49 = vor.u32 %v1781_v44, %v1526_v46  ;;  %v1829_v14 = vld [vmem:[#allocation8 + $0x1b8] sm:$0xf0] }
  0x9d   :  { %1141 = vmatpush.bf16.msra.mxu2 %v1705_v19  ;;  %1106 = vmatpush.bf16.msrb.mxu3 %v1581_v21  ;;  %v1525_v45 = vor.u32 %v1784_v43, %v1524_v42  ;;  %v1533_v50 = vor.u32 %v1785_v48, %v1532_v47  ;;  %v1501_v0 = vor.u32 %v1774_v59, %v1498_v61  ;;  %v1710_v11 = vld [vmem:[#allocation8 + $0x1b4] sm:$0xf0]  ;;  %v1789_v16 = vld [vmem:[#allocation8 + $0x7c] sm:$0xf]  ;;  %v1682_v19 = vld [vmem:[#allocation8 + $0x17c] sm:$0xf0] }
  0x9e   :  { %v1709_v4 = vor.u32 %v1828_v9, %v1708_v7  ;;  %v1685_v13 = vor.u32 %v1818_v52, %v1682_v19  ;;  %v1688_v20 = vld [vmem:[#allocation8 + $0x168] sm:$0xf]  ;;  %v1822_v21 = vld [vmem:[#allocation8 + $0x180] sm:$0xf0]  ;;  %v1534_v24 = vld [vmem:[#allocation8 + $0x5c] sm:$0xf0] }
  0x9f   :  { %v1689_v22 = vor.u32 %v1822_v21, %v1688_v20  ;;  %v1782_v23 = vld [vmem:[#allocation8 + $0x44] sm:$0xf]  ;;  %v1811_v28 = vld [vmem:[#allocation8 + $0x12c] sm:$0xf]  ;;  %v1660_v32 = vld [vmem:[#allocation8 + $0x130] sm:$0xf] }
  0xa0   :  { %1116 = vmatpush.bf16.msra.mxu0 %v1669_v56  ;;  %1129 = vmatpush.bf16.msra.mxu1 %v1673_v57  ;;  %v1621_v56 = vor.u32 %v1803_v54, %v1618_v55  ;;  %v1496_v57 = vld [vmem:[#allocation8] sm:$0xf]  ;;  %v1814_v27 = vld [vmem:[#allocation8 + $0x140] sm:$0xf0]  ;;  %v1775_v35 = vld [vmem:[#allocation8 + $0xc] sm:$0xf] }
  0xa1   :  { %1142 = vmatpush.bf16.msra.mxu2 %v1677_v29  ;;  %1107 = vmatpush.bf16.msrb.mxu3 %v1553_v33  ;;  %v1497_v60 = vor.u32 %v1777_v58, %v1496_v57  ;;  %v1654_v29 = vld [vmem:[#allocation8 + $0x144] sm:$0xf0]  ;;  %v1815_v33 = vld [vmem:[#allocation8 + $0x148] sm:$0xf0]  ;;  %v1804_v40 = vld [vmem:[#allocation8 + $0xf4] sm:$0xf] }
  0xa2   :  { %v1657_v31 = vor.u32 %v1811_v28, %v1654_v29  ;;  %v1661_v34 = vor.u32 %v1815_v33, %v1660_v32  ;;  %v1506_v36 = vld [vmem:[#allocation8 + $0x24] sm:$0xf0]  ;;  %v1807_v39 = vld [vmem:[#allocation8 + $0x108] sm:$0xf0]  ;;  %v1632_v44 = vld [vmem:[#allocation8 + $0xf8] sm:$0xf] }
  0xa3   :  { %v1596_v47 = vld [vmem:[#allocation8 + $0xb8] sm:$0xf]  ;;  %v1800_v48 = vld [vmem:[#allocation8 + $0xd0] sm:$0xf0]  ;;  %v1604_v58 = vld [vmem:[#allocation8 + $0xc0] sm:$0xf] }
  0xa4   :  { %1117 = vmatpush.bf16.msra.mxu0 %v1641_v62  ;;  %1130 = vmatpush.bf16.msra.mxu1 %v1645_v1  ;;  %v1504_v62 = vld [vmem:[#allocation8 + $0x8] sm:$0xf]  ;;  %v1598_v57 = vld [vmem:[#allocation8 + $0xd4] sm:$0xf0]  ;;  %v1801_v59 = vld [vmem:[#allocation8 + $0xd8] sm:$0xf0] }
  0xa5   :  { %1143 = vmatpush.bf16.msra.mxu2 %v1649_v41  ;;  %1108 = vmatpush.bf16.msrb.mxu3 %v1525_v45  ;;  %v1505_v1 = vor.u32 %v1778_v63, %v1504_v62  ;;  %v1626_v41 = vld [vmem:[#allocation8 + $0x10c] sm:$0xf0]  ;;  %v1808_v45 = vld [vmem:[#allocation8 + $0x110] sm:$0xf0]  ;;  %v1605_v61 = vor.u32 %v1801_v59, %v1604_v58  ;;  %v1568_v62 = vld [vmem:[#allocation8 + $0x80] sm:$0xf] }
  0xa6   :  { %v1629_v43 = vor.u32 %v1804_v40, %v1626_v41  ;;  %v1633_v46 = vor.u32 %v1808_v45, %v1632_v44  ;;  %v1793_v63 = vld [vmem:[#allocation8 + $0x98] sm:$0xf0]  ;;  %v1540_v9 = vld [vmem:[#allocation8 + $0x48] sm:$0xf]  ;;  %v1776_v20 = vld [vmem:[#allocation8 + $0x14] sm:$0xf] }
  0xa7   :  { %v1569_v7 = vor.u32 %v1793_v63, %v1568_v62  ;;  %v1514_v21 = vld [vmem:[#allocation8 + $0x2c] sm:$0xf0]  ;;  %v798_v45 = vld [vmem:[#allocation10] sm:$0xff] }
  0xa8   :  { %1118 = vmatpush.bf16.msra.mxu0 %v1613_v12  ;;  %1131 = vmatpush.bf16.msra.mxu1 %v1617_v15  ;;  %v1713_v12 = vor.u32 %v1825_v10, %v1710_v11  ;;  %v1717_v15 = vor.u32 %v1829_v14, %v1716_v5  ;;  %v1577_v10 = vor.u32 %v1794_v3, %v1576_v2  ;;  %v1786_v11 = vld [vmem:[#allocation8 + $0x60] sm:$0xf0]  ;;  %v1548_v5 = vld [vmem:[#allocation8 + $0x50] sm:$0xf]  ;;  %v1787_v14 = vld [vmem:[#allocation8 + $0x68] sm:$0xf0] }
  0xa9   :  { %1144 = vmatpush.bf16.msra.mxu2 %v1621_v56  ;;  %1109 = vmatpush.bf16.msrb.mxu3 %v1497_v60  ;;  %v1597_v56 = vor.u32 %v1800_v48, %v1596_v47  ;;  %v801_v48 = vperm.slane %v798_v45, 1  ;;  %v1197_v59 = vld.sshfl [vmem:[#allocation1 + $0x8] sm:$0xff pattern:$0x73625140] }
  0xaa   :  { %699 = vmatmul.bf16.vlgmr.msrb.gmra.mxu0 %v184_v17  ;;  %712 = vmatmul.bf16.vlgmr.msrb.gmra.mxu1 %v185_v6  ;;  %v1562_v17 = vld [vmem:[#allocation8 + $0x94] sm:$0xf0]  ;;  %v1680_v6 = vld [vmem:[#allocation8 + $0x160] sm:$0xf] }
  0xab   :  { %725 = vmatmul.bf16.vlgmr.msrb.gmra.mxu2 %v186_v18  ;;  %v1565_v18 = vor.u32 %v1789_v16, %v1562_v17  ;;  %v1681_v53 = vor.u32 %v1821_v51, %v1680_v6  ;;  %v1541_v6 = vor.u32 %v1786_v11, %v1540_v9  ;;  %v1512_v51 = vld [vmem:[#allocation8 + $0x10] sm:$0xf] }
  0xac   :  { %1119 = vmatpush.bf16.msra.mxu0 %v1585_v25  ;;  %1132 = vmatpush.bf16.msra.mxu1 %v1589_v26  ;;  %v1652_v25 = vld [vmem:[#allocation8 + $0x128] sm:$0xf]  ;;  %v1537_v26 = vor.u32 %v1782_v23, %v1534_v24  ;;  %v1780_v23 = vld [vmem:[#allocation8 + $0x30] sm:$0xf0] }
  0xad   :  { %1145 = vmatpush.bf16.msra.mxu2 %v1593_v8  ;;  %1154 = vmatpush.bf16.msra.mxu3 %v1709_v4  ;;  %v1653_v30 = vor.u32 %v1814_v27, %v1652_v25  ;;  %v1783_v4 = vld [vmem:[#allocation8 + $0x4c] sm:$0xf] }
  0xae   :  { %v1198_v2 = vld.sshfl [vmem:[#allocation1 + $0x10] sm:$0xff pattern:$0x73625140] }
  0xb0   :  { %1120 = vmatpush.bf16.msra.mxu0 %v1557_v37  ;;  %1133 = vmatpush.bf16.msra.mxu1 %v1561_v38  ;;  %v1624_v37 = vld [vmem:[#allocation8 + $0xf0] sm:$0xf]  ;;  %v1509_v38 = vor.u32 %v1775_v35, %v1506_v36 }
  0xb1   :  { %1146 = vmatpush.bf16.msra.mxu2 %v1565_v18  ;;  %1155 = vmatpush.bf16.msra.mxu3 %v1681_v53  ;;  %v1625_v42 = vor.u32 %v1807_v39, %v1624_v37  ;;  %v1549_v53 = vor.u32 %v1787_v14, %v1548_v5  ;;  %v730_v37 = vld [vmem:[%s2138_s4] sm:$0x3]  ;;  %s2007_s4 = smov [#allocation11]  }
  0xb2   :  { %s1256_s17 = sshll.u32 %s2007_s4, 4  ;;  %s1257_s17 = int_to_ptr.vmem [resolvable:$true] %s1256_s17 }
  0xb4   :  { %1121 = vmatpush.bf16.msra.mxu0 %v1529_v49  ;;  %1134 = vmatpush.bf16.msra.mxu1 %v1533_v50  ;;  %v1797_v49 = vld [vmem:[#allocation8 + $0xbc] sm:$0xf] }
  0xb5   :  { %1147 = vmatpush.bf16.msra.mxu2 %v1537_v26  ;;  %1156 = vmatpush.bf16.msra.mxu3 %v1653_v30  ;;  %v1844_v50 = vld [vmem:[%s2140_s6] ss:$0 sm:$0xff]  ;;  %v1601_v60 = vor.u32 %v1797_v49, %v1598_v57  ;;  %v1517_v26 = vor.u32 %v1776_v20, %v1514_v21  ;;  %v800_v49 = vperm.slane %v798_v45, 0  ;;  %v1202_v20 = vld.sshfl [vmem:[#allocation1 + $0x30] sm:$0xff pattern:$0x73625140] }
  0xb8   :  { %1122 = vmatpush.bf16.msra.mxu0 %v1501_v0  ;;  %1135 = vmatpush.bf16.msra.mxu1 %v1505_v1  ;;  %v1790_v0 = vld [vmem:[#allocation8 + $0x84] sm:$0xf]  ;;  %v1570_v1 = vld [vmem:[#allocation8 + $0x9c] sm:$0xf0] }
  0xb9   :  { %1148 = vmatpush.bf16.msra.mxu2 %v1509_v38  ;;  %1157 = vmatpush.bf16.msra.mxu3 %v1625_v42  ;;  %v1573_v8 = vor.u32 %v1790_v0, %v1570_v1  ;;  %v803_v1 = vperm.slane %v798_v45, 3 }
  0xbc   :  { %1167 = vmatpush.bf16.msrb.mxu0 %v1713_v12  ;;  %1180 = vmatpush.bf16.msrb.mxu1 %v1717_v15  ;;  %v1542_v12 = vld [vmem:[#allocation8 + $0x64] sm:$0xf0] }
  0xbd   :  { %1158 = vmatpush.bf16.msra.mxu3 %v1597_v56  ;;  %v1545_v18 = vor.u32 %v1783_v4, %v1542_v12  ;;  %v802_v56 = vperm.slane %v798_v45, 2  ;;  %v805_v4 = vperm.slane %v798_v45, 5  ;;  %v1199_v12 = vld.sshfl [vmem:[#allocation1 + $0x18] sm:$0xff pattern:$0x73625140] }
  0xc0   :  { %1168 = vmatpush.bf16.msrb.mxu0 %v1685_v13  ;;  %1181 = vmatpush.bf16.msrb.mxu1 %v1689_v22  ;;  %v1779_v13 = vld [vmem:[#allocation8 + $0x28] sm:$0xf0]  ;;  %v1520_v22 = vld [vmem:[#allocation8 + $0x18] sm:$0xf] }
  0xc1   :  { %1159 = vmatpush.bf16.msra.mxu3 %v1569_v7  ;;  %v1513_v25 = vor.u32 %v1779_v13, %v1512_v51  ;;  %v1521_v28 = vor.u32 %v1780_v23, %v1520_v22  ;;  %v1200_v22 = vld.sshfl [vmem:[#allocation1 + $0x20] sm:$0xff pattern:$0x73625140] }
  0xc4   :  { %1169 = vmatpush.bf16.msrb.mxu0 %v1657_v31  ;;  %1182 = vmatpush.bf16.msrb.mxu1 %v1661_v34 }
  0xc5   :  { %1160 = vmatpush.bf16.msra.mxu3 %v1541_v6 }
  0xc8   :  { %1170 = vmatpush.bf16.msrb.mxu0 %v1629_v43  ;;  %1183 = vmatpush.bf16.msrb.mxu1 %v1633_v46 }
  0xc9   :  { %1161 = vmatpush.bf16.msra.mxu3 %v1513_v25 }
  0xcc   :  { %1171 = vmatpush.bf16.msrb.mxu0 %v1601_v60  ;;  %1184 = vmatpush.bf16.msrb.mxu1 %v1605_v61 }
  0xd0   :  { %1172 = vmatpush.bf16.msrb.mxu0 %v1573_v8  ;;  %1185 = vmatpush.bf16.msrb.mxu1 %v1577_v10 }
  0xd4   :  { %1173 = vmatpush.bf16.msrb.mxu0 %v1545_v18  ;;  %1186 = vmatpush.bf16.msrb.mxu1 %v1549_v53  ;;  %v1201_v53 = vld.sshfl [vmem:[#allocation1 + $0x28] sm:$0xff pattern:$0x73625140] }
  0xd8   :  { %1174 = vmatpush.bf16.msrb.mxu0 %v1517_v26  ;;  %1187 = vmatpush.bf16.msrb.mxu1 %v1521_v28 }
 0x117   :  { %v648_v54 = vpop.f32.mrf.mxu0  ;;  %v661_v55 = vpop.f32.mrf.mxu1 }
 0x118   :  { %v649_v15 = vadd.f32 %v1844_v50, %v648_v54  ;;  %v1196_v54 = vld.sshfl [vmem:[#allocation1] sm:$0xff pattern:$0x73625140] }
 0x11a   :  { %v662_v24 = vadd.f32 %v661_v55, %v649_v15  ;;  %v806_v15 = vperm.slane %v798_v45, 6 }
 0x11e   :  { %v674_v16 = vpop.f32.mrf.mxu2  ;;  %v687_v17 = vpop.f32.mrf.mxu3 }
 0x11f   :  { %v650_v52 = vpop.f32.mrf.mxu0  ;;  %v663_v19 = vpop.f32.mrf.mxu1  ;;  %v675_v27 = vadd.f32 %v674_v16, %v662_v24 }
 0x121   :  { %v688_v31 = vadd.f32 %v687_v17, %v675_v27  ;;  %v804_v17 = vperm.slane %v798_v45, 4 }
 0x126   :  { %v676_v29 = vpop.f32.mrf.mxu2  ;;  %v689_v30 = vpop.f32.mrf.mxu3 }
 0x127   :  { %v700_v32 = vpop.f32.mrf.mxu0  ;;  %v713_v33 = vpop.f32.mrf.mxu1 }
 0x128   :  { %v701_v34 = vadd.f32 %v700_v32, %v688_v31 }
 0x12a   :  { %v714_v35 = vadd.f32 %v713_v33, %v701_v34 }
 0x12e   :  { %v726_v36 = vpop.f32.mrf.mxu2 }
 0x12f   :  { %v727_v38 = vadd.f32 %v726_v36, %v714_v35  ;;  %v702_v39 = vpop.f32.mrf.mxu0  ;;  %v715_v40 = vpop.f32.mrf.mxu1 }
 0x131   :  { %v731_v41 = vadd.f32 %v730_v37, %v727_v38 }
 0x133   :  { %v732_v42 = vmax.f32 %v731_v41, 0.0 }
 0x135   :  { %v733_v43 = vpack.c.bf16 %v732_v42, %v732_v42 }
 0x136   :  { %v728_v44 = vpop.f32.mrf.mxu2 }
 0x137   :  { %1110 = vmatmul.bf16.vlgmr.msrb.gmra.mxu3 %v733_v43  ;;  %1123 = vmatmul.bf16.vlgmr.msra.gmra.mxu0 %v733_v43 }
 0x138   :  { %1136 = vmatmul.bf16.vlgmr.msra.gmra.mxu1 %v733_v43  ;;  %1149 = vmatmul.bf16.vlgmr.msra.gmra.mxu2 %v733_v43 }
 0x147   :  { %1162 = vmatmul.bf16.vlgmr.msra.gmra.mxu3 %v733_v43  ;;  %1175 = vmatmul.bf16.vlgmr.msrb.gmra.mxu0 %v733_v43 }
 0x148   :  { %1188 = vmatmul.bf16.vlgmr.msrb.gmra.mxu1 %v733_v43 }
 0x1b4   :  { %v1124_v46 = vpop.f32.mrf.mxu0 }
 0x1b5   :  { %v1137_v47 = vpop.f32.mrf.mxu1  ;;  %v1125_v55 = vadd.f32 %v1124_v46, %v801_v48 }
 0x1b6   :  { %v1138_v0 = vadd.f32 %v1137_v47, %v802_v56 }
 0x1b7   :  { %v1211_v63 = vsub.f32 %v1125_v55, %v1197_v59 }
 0x1b8   :  { %v1212_v9 = vsub.f32 %v1138_v0, %v1198_v2 }
 0x1b9   :  { %v1218_v8 = vmul.f32 %v1211_v63, %v1211_v63 }
 0x1ba   :  { %v1111_v50 = vpop.f32.mrf.mxu3  ;;  %v1219_v18 = vmul.f32 %v1212_v9, %v1212_v9 }
 0x1bb   :  { %v1112_v57 = vadd.f32 %v1111_v50, %v800_v49  ;;  %v1150_v58 = vpop.f32.mrf.mxu2  ;;  %v1226_v6 = vsel %vm1224_vm0, %v1218_v8, 0.0 }
 0x1bc   :  { %v1126_v60 = vpop.f32.mrf.mxu0  ;;  %v1151_v10 = vadd.f32 %v1150_v58, %v803_v1  ;;  %v1228_v23 = vsel %vm1224_vm0, %v1219_v18, 0.0 }
 0x1bd   :  { %v1210_v61 = vsub.f32 %v1112_v57, %v1196_v54  ;;  %v1139_v62 = vpop.f32.mrf.mxu1 }
 0x1be   :  { %v1213_v51 = vsub.f32 %v1151_v10, %v1199_v12 }
 0x1bf   :  { %v1217_v3 = vmul.f32 %v1210_v61, %v1210_v61 }
 0x1c0   :  { %v1220_v24 = vmul.f32 %v1213_v51, %v1213_v51 }
 0x1c1   :  { %v1225_v14 = vsel %vm1224_vm0, %v1217_v3, 0.0 }
 0x1c2   :  { %v1113_v7 = vpop.f32.mrf.mxu3  ;;  %v1227_v19 = vadd.f32 %v1226_v6, %v1225_v14  ;;  %v1230_v32 = vsel %vm1224_vm0, %v1220_v24, 0.0 }
 0x1c3   :  { %v1152_v11 = vpop.f32.mrf.mxu2 }
 0x1c4   :  { %v1176_v5 = vpop.f32.mrf.mxu0  ;;  %v1229_v28 = vadd.f32 %v1228_v23, %v1227_v19 }
 0x1c5   :  { %v1189_v16 = vpop.f32.mrf.mxu1  ;;  %v1177_v52 = vadd.f32 %v1176_v5, %v805_v4 }
 0x1c6   :  { %v1190_v13 = vadd.f32 %v1189_v16, %v806_v15  ;;  %v1231_v35 = vadd.f32 %v1230_v32, %v1229_v28 }
 0x1c7   :  { %v1215_v25 = vsub.f32 %v1177_v52, %v1201_v53 }
 0x1c8   :  { %v1216_v29 = vsub.f32 %v1190_v13, %v1202_v20 }
 0x1c9   :  { %v1222_v33 = vmul.f32 %v1215_v25, %v1215_v25 }
 0x1ca   :  { %v1163_v21 = vpop.f32.mrf.mxu3  ;;  %v1223_v36 = vmul.f32 %v1216_v29, %v1216_v29 }
 0x1cb   :  { %v1164_v26 = vadd.f32 %v1163_v21, %v804_v17  ;;  %v1234_v40 = vsel %vm1224_vm0, %v1222_v33, 0.0 }
 0x1cc   :  { %v1178_v27 = vpop.f32.mrf.mxu0  ;;  %v1236_v42 = vsel %vm1224_vm0, %v1223_v36, 0.0 }
 0x1cd   :  { %v1214_v30 = vsub.f32 %v1164_v26, %v1200_v22  ;;  %v1191_v31 = vpop.f32.mrf.mxu1 }
 0x1cf   :  { %v1221_v34 = vmul.f32 %v1214_v30, %v1214_v30 }
 0x1d1   :  { %v1232_v37 = vsel %vm1224_vm0, %v1221_v34, 0.0 }
 0x1d2   :  { %v1165_v38 = vpop.f32.mrf.mxu3  ;;  %v1233_v39 = vadd.f32 %v1232_v37, %v1231_v35 }
 0x1d4   :  { %v1235_v41 = vadd.f32 %v1234_v40, %v1233_v39 }
 0x1d6   :  { %v1237_v43 = vadd.f32 %v1236_v42, %v1235_v41 }
 0x1d8   :  { %1238 = vadd.xlane.f32.xlu1 %v1237_v43 }
 0x24b   :  { %v1239_v44 = vpop.xlane.xlu1 %1238 }
 0x24c   :  { %v1240_v45 = vrot.slane %v1239_v44, 4 }
 0x24e   :  { %v1241_v46 = vadd.f32 %v1240_v45, %v1239_v44 }
 0x250   :  { %v1242_v47 = vrot.slane %v1241_v46, 2 }
 0x252   :  { %v1243_v48 = vadd.f32 %v1242_v47, %v1241_v46 }
 0x254   :  { %v1244_v49 = vrot.slane %v1243_v48, 1 }
 0x256   :  { %v1245_v50 = vadd.f32 %v1244_v49, %v1243_v48 }
 0x258   :  { %1830 = vpush %v1245_v50 }
 0x289   :  { %s1831_s21 = spop %1830 }
 0x28a   :  { %v1247_v54 = vstv %s1831_s21 }
 0x28b   :  { %v1248_v55 = vmul.f32 0.0006377551, %v1247_v54 }
 0x28d   :  { %1250 = vst.msk [vmem:[#allocation11] sm:$0x1] %vm1249_vm1, %v1248_v55 }
 0x28e   :  { %1261 = dma.vmem_to_hbm [thread:$0]  %s1257_s17, 16, %s1259_s20, [#allocation4]  }
 0x28f   :  { %1995 = dma.done.wait [#allocation4], 16  }
 0x290   :  { %1996 = vsyncadd [#allocation4], 4294967280 }
 0x291   :  { %1266 = vsyncpa [#allocation3], 1 }
 0x292   :  { %1267 = vsyncpa [#allocation6], 1 }
 0x293   :  { %1268 = vsyncpa [#allocation9], 1 }
 0x294   :  { %1269 = vsyncpa [#allocation4], 1 }

</bundles_post_ra>
